<compile_context>
chip_gen: v7x
topology: tpu7x:2x2x1
jax: 0.10.0
libtpu: 0.0.40
codegen_flags: <defaults>
</compile_context>

<pallas_src>
import functools
import math

import jax
import jax.numpy as jnp
from jax.experimental import pallas as pl
from jax.experimental.pallas import tpu as pltpu

DICT_SIZE = 53 + 3 + 11  # 67
DPAD = 128               # dictionary axis padded to one lane tile


def _critic_kernel(tok_ref, wt_ref, b_ref, out_ref, *, group, dpad):
    TB, P = tok_ref.shape          # batch tile, token positions
    H = b_ref.shape[1]             # hidden size
    K = group * dpad               # gather contraction depth (lane aligned)
    NG = P // group                # number of gather groups
    PK = P * dpad                  # rows of the folded table
    cdt = wt_ref.dtype             # matmul operand dtype (f32 or bf16)

    tok = tok_ref[...]             # [TB, P] int32
    biases = b_ref[...]            # [8, H]  f32 (b1..b5, wo, bo, pad)
    lane = jax.lax.broadcasted_iota(jnp.int32, (1, K), 1)   # hoisted, tiny

    # ---- layer 1: embedding gather fused with W1 via the pre-folded table -------
    # Row tok[:, p] of T[p] is picked with a one-hot matmul; G positions share one
    # K = G*dpad matmul. Only the z1 accumulator is carried across groups.
    z1 = jnp.zeros((TB, H), jnp.float32)
    for g in range(NG):                                      # short static loop
        c0 = g * group
        oh = (lane == tok[:, c0:c0 + 1]).astype(cdt)         # [TB, K]
        for j in range(1, group):
            oh = oh + (lane == (tok[:, c0 + j:c0 + j + 1] + j * dpad)).astype(cdt)
        t_g = wt_ref[g * K:(g + 1) * K, :]                   # tile-aligned slice
        z1 = z1 + jnp.dot(oh, t_g, preferred_element_type=jnp.float32)
    h1 = jnp.maximum(z1 + biases[0:1, :], 0.0)

    # ---- layers 2..5 (packed W2..W5 live after the folded table) -----------------
    def dense(x, widx, bidx):
        w = wt_ref[PK + widx * H:PK + (widx + 1) * H, :]     # [H, H]
        return (jnp.dot(x.astype(cdt), w, preferred_element_type=jnp.float32)
                + biases[bidx:bidx + 1, :])

    z2 = dense(h1, 0, 1)                                     # hidden_layer2(x1)
    h2 = jnp.maximum(z2, 0.0)
    h3 = jnp.maximum(dense(h2, 1, 2), 0.0)
    h4 = jnp.maximum(dense(h3, 2, 3), 0.0)
    h5 = jnp.maximum(dense(h4, 3, 4) + z2, 0.0)              # skip connection

    # ---- output layer: [1,H] x [TB,H]^T -> lane-dense [1, TB] row ----------------
    wo = biases[5:6, :]                                      # [1, H]
    bo = biases[6:7, 0:1]                                    # [1, 1]
    row = jax.lax.dot_general(wo, h5, (((1,), (1,)), ((), ())),
                              preferred_element_type=jnp.float32) + bo   # [1, TB]
    out_ref[...] = row.reshape(1, 1, TB)


def pack_params(params, *, compute_dtype=jnp.float32):
    """Fold emb@W1 per position (padded to 128 lanes) and coalesce all weights.

    compute_dtype=jnp.bfloat16 is recommended on v6e/v7x (matmul operands only;
    activations/biases stay f32). Default f32 keeps bit-level parity on v5e.
    """
    emb = params["emb"].astype(jnp.float32)                  # [D, E]
    w1 = params["w1"].astype(jnp.float32)                    # [P*E, H]
    D, E = emb.shape
    F, H = w1.shape
    P = F // E

    # Folded gather table: T[p] = emb @ W1[p*E:(p+1)*E], padded D -> DPAD.
    tbl = jnp.einsum("de,peh->pdh", emb, w1.reshape(P, E, H))    # [P, D, H]
    tbl = jnp.pad(tbl, ((0, 0), (0, DPAD - D), (0, 0))).reshape(P * DPAD, H)

    w_rest = jnp.concatenate(
        [params["w2"], params["w3"], params["w4"], params["w5"]], axis=0
    ).astype(jnp.float32)                                    # [4H, H]
    wt = jnp.concatenate([tbl, w_rest], axis=0).astype(compute_dtype)

    b_packed = jnp.concatenate(
        [params["b1"], params["b2"], params["b3"], params["b4"], params["b5"],
         params["wo"].T,                                     # output weight row
         jnp.pad(params["bo"], ((0, 0), (0, H - 1))),        # output bias
         jnp.zeros((1, H), jnp.float32)],                    # pad to 8 sublanes
        axis=0).astype(jnp.float32)                          # [8, H]

    return {"wt": wt, "b": b_packed, "dpad": DPAD, "dict_size": D, "positions": P}


def _round_up(x, m):
    return ((x + m - 1) // m) * m


def _pick_group(P, dpad, max_k=256):
    """Largest group size dividing P with K = group*dpad <= max_k."""
    g = max(1, max_k // dpad)
    while g > 1 and P % g:
        g -= 1
    return g


def critic_forward(x_tokens, packed):
    """x_tokens: [B, input_size] int token ids.  Returns [B, 1] float32."""
    B, P = x_tokens.shape
    wt, b = packed["wt"], packed["b"]
    dpad, D = packed["dpad"], packed["dict_size"]
    H = b.shape[1]
    PK = P * dpad
    assert wt.shape == (PK + 4 * H, H)

    # Clamp ids (matches jnp.take / reference gather for out-of-range tokens).
    tok = jnp.clip(x_tokens.astype(jnp.int32), 0, D - 1)

    # Batch tiling: sublane-aligned; >=2 grid steps once there is enough work so
    # the "parallel" axis can split across both v7x TensorCores; cap at 128 rows.
    b8 = _round_up(B, 8)
    TB = min(128, max(8, _round_up((b8 + 1) // 2, 8))) if b8 >= 16 else b8
    Bp = _round_up(b8, TB)
    NT = Bp // TB
    if Bp != B:
        tok = jnp.pad(tok, ((0, Bp - B), (0, 0)))            # pad rows -> token 0

    G = _pick_group(P, dpad)

    cost = pl.CostEstimate(
        flops=2 * Bp * (PK * H + 4 * H * H + H),
        transcendentals=0,
        bytes_accessed=(tok.size * 4 + wt.size * wt.dtype.itemsize
                        + b.size * 4 + NT * TB * 4),
    )

    out = pl.pallas_call(
        functools.partial(_critic_kernel, group=G, dpad=dpad),
        out_shape=jax.ShapeDtypeStruct((NT, 1, TB), jnp.float32),
        grid_spec=pltpu.PrefetchScalarGridSpec(
            num_scalar_prefetch=0,
            grid=(NT,),
            in_specs=[
                pl.BlockSpec((TB, P), lambda i: (i, 0)),           # token ids (tiled)
                pl.BlockSpec((PK + 4 * H, H), lambda i: (0, 0)),   # weights (resident)
                pl.BlockSpec((8, H), lambda i: (0, 0)),            # biases (resident)
            ],
            out_specs=pl.BlockSpec((1, 1, TB), lambda i: (i, 0, 0)),  # lane-dense row
        ),
        compiler_params=pltpu.CompilerParams(dimension_semantics=("parallel",)),
        cost_estimate=cost,
    )(tok, wt, b)
    return out.reshape(Bp, 1)[:B]


# ----------------------------------------------------------------------------- init / reference


def _orthogonal(key, shape, gain):
    """Deterministic orthogonal init (matches nn.init.orthogonal_ semantics)."""
    rows, cols = shape
    n = max(rows, cols)
    a = jax.random.normal(key, (n, n), dtype=jnp.float32)
    q, r = jnp.linalg.qr(a)
    q = q * jnp.sign(jnp.diag(r))[None, :]
    return gain * q[:rows, :cols]


def init_params(key, input_size, hidden_size, emb_size):
    ks = jax.random.split(key, 16)
    F = input_size * emb_size
    g = math.sqrt(2.0)

    def lin_bias(k, fan_in, out):
        bound = 1.0 / math.sqrt(fan_in)
        return jax.random.uniform(k, (1, out), jnp.float32, -bound, bound)

    def lin_weight_default(k, fan_in, out):
        bound = 1.0 / math.sqrt(fan_in)
        return jax.random.uniform(k, (fan_in, out), jnp.float32, -bound, bound)

    return {
        "emb": jax.random.normal(ks[0], (DICT_SIZE, emb_size), jnp.float32),
        # orthogonal_(weight) on PyTorch's [out, in]; stored transposed [in, out].
        "w1": _orthogonal(ks[1], (hidden_size, F), g).T,
        "b1": lin_bias(ks[2], F, hidden_size),
        "w2": _orthogonal(ks[3], (hidden_size, hidden_size), g).T,
        "b2": lin_bias(ks[4], hidden_size, hidden_size),
        "w3": _orthogonal(ks[5], (hidden_size, hidden_size), g).T,
        "b3": lin_bias(ks[6], hidden_size, hidden_size),
        # hidden_layer4 / hidden_layer5 keep PyTorch's default Linear init
        "w4": lin_weight_default(ks[7], hidden_size, hidden_size),
        "b4": lin_bias(ks[8], hidden_size, hidden_size),
        "w5": lin_weight_default(ks[9], hidden_size, hidden_size),
        "b5": lin_bias(ks[10], hidden_size, hidden_size),
        "wo": _orthogonal(ks[11], (1, hidden_size), 0.01).T,
        "bo": lin_bias(ks[12], hidden_size, 1),
    }


def _reference_forward(x_tokens, params):
    """Pure-JAX reference (faithful to the PyTorch forward)."""
    x = jnp.take(params["emb"], x_tokens, axis=0).reshape(x_tokens.shape[0], -1)
    x1 = jax.nn.relu(x @ params["w1"] + params["b1"])
    z2 = x1 @ params["w2"] + params["b2"]
    x2 = jax.nn.relu(z2)
    x3 = jax.nn.relu(x2 @ params["w3"] + params["b3"])
    x4 = jax.nn.relu(x3 @ params["w4"] + params["b4"])
    x5 = jax.nn.relu(x4 @ params["w5"] + params["b5"] + z2)
    return x5 @ params["wo"] + params["bo"]


if __name__ == "__main__":
    key = jax.random.PRNGKey(0)
    input_size, hidden_size, emb_size = 8, 32, 4
    batch = 2

    pk, xk = jax.random.split(key)
    params = init_params(pk, input_size, hidden_size, emb_size)
    packed = pack_params(params)   # pass compute_dtype=jnp.bfloat16 on v6e/v7x
    x_tokens = jax.random.randint(xk, (batch, input_size), 0, DICT_SIZE, dtype=jnp.int32)

    out = jax.block_until_ready(critic_forward(x_tokens, packed))
    ref = _reference_forward(x_tokens, params)

    assert out.shape == (batch, 1)
    assert jnp.allclose(out, ref, atol=1e-4, rtol=1e-4), (out, ref)

    print("KERNEL_OK")
</pallas_src>

<mosaic_0001>
module attributes {stable_mosaic.version = 11 : i64} {
  func.func @_critic_kernel(%arg0: i32, %arg1: memref<8x8xi32, #tpu.memory_space<vmem>>, %arg2: memref<1152x32xf32, #tpu.memory_space<vmem>>, %arg3: memref<8x32xf32, #tpu.memory_space<vmem>>, %arg4: memref<1x1x8xf32, #tpu.memory_space<vmem>>) attributes {dimension_semantics = [#tpu.dimension_semantics<parallel>], iteration_bounds = array<i64: 1>, scalar_prefetch = 0 : i64, scratch_operands = 0 : i64, tpu.core_type = #tpu.core_type<tc>, window_params = [{transform_indices = @transform_0, window_bounds = array<i64: 8, 8>}, {pipeline_mode = #tpu.pipeline_mode<synchronous>, transform_indices = @transform_1, window_bounds = array<i64: 1152, 32>}, {pipeline_mode = #tpu.pipeline_mode<synchronous>, transform_indices = @transform_2, window_bounds = array<i64: 8, 32>}, {transform_indices = @transform_3, window_bounds = array<i64: 1, 1, 8>}]} {
    %c0 = arith.constant 0 : index
    %c0_0 = arith.constant 0 : index
    %0 = vector.load %arg1[%c0, %c0_0] : memref<8x8xi32, #tpu.memory_space<vmem>>, vector<8x8xi32>
    %c0_1 = arith.constant 0 : index
    %c0_2 = arith.constant 0 : index
    %1 = vector.load %arg3[%c0_1, %c0_2] : memref<8x32xf32, #tpu.memory_space<vmem>>, vector<8x32xf32>
    %2 = tpu.iota {dimensions = array<i32: 1>} : vector<1x256xi32>
    %cst = arith.constant 0.000000e+00 : f32
    %3 = vector.broadcast %cst : f32 to vector<8x32xf32>
    %4 = vector.extract_strided_slice %0 {offsets = [0, 0], sizes = [8, 1], strides = [1, 1]} : vector<8x8xi32> to vector<8x1xi32>
    %5 = vector.broadcast %2 : vector<1x256xi32> to vector<8x256xi32>
    %6 = vector.broadcast %4 : vector<8x1xi32> to vector<8x256xi32>
    %7 = arith.cmpi eq, %5, %6 : vector<8x256xi32>
    %8 = arith.extui %7 : vector<8x256xi1> to vector<8x256xi32>
    %9 = arith.sitofp %8 : vector<8x256xi32> to vector<8x256xf32>
    %10 = vector.extract_strided_slice %0 {offsets = [0, 1], sizes = [8, 1], strides = [1, 1]} : vector<8x8xi32> to vector<8x1xi32>
    %c128_i32 = arith.constant 128 : i32
    %11 = vector.broadcast %c128_i32 : i32 to vector<8x1xi32>
    %12 = arith.addi %10, %11 : vector<8x1xi32>
    %13 = vector.broadcast %2 : vector<1x256xi32> to vector<8x256xi32>
    %14 = vector.broadcast %12 : vector<8x1xi32> to vector<8x256xi32>
    %15 = arith.cmpi eq, %13, %14 : vector<8x256xi32>
    %16 = arith.extui %15 : vector<8x256xi1> to vector<8x256xi32>
    %17 = arith.sitofp %16 : vector<8x256xi32> to vector<8x256xf32>
    %18 = arith.addf %9, %17 : vector<8x256xf32>
    %c0_3 = arith.constant 0 : index
    %c0_4 = arith.constant 0 : index
    %19 = vector.load %arg2[%c0_3, %c0_4] : memref<1152x32xf32, #tpu.memory_space<vmem>>, vector<256x32xf32>
    %cst_5 = arith.constant dense<0.000000e+00> : vector<8x32xf32>
    %20 = tpu.matmul %18, %19, %cst_5 {dimension_numbers = #tpu.dot_dimension_numbers<[1], [0], [0], [1], [0, 0, 1, 1], [], []>} : vector<8x256xf32>, vector<256x32xf32>, vector<8x32xf32> -> vector<8x32xf32>
    %21 = arith.addf %3, %20 : vector<8x32xf32>
    %22 = vector.extract_strided_slice %0 {offsets = [0, 2], sizes = [8, 1], strides = [1, 1]} : vector<8x8xi32> to vector<8x1xi32>
    %23 = vector.broadcast %2 : vector<1x256xi32> to vector<8x256xi32>
    %24 = vector.broadcast %22 : vector<8x1xi32> to vector<8x256xi32>
    %25 = arith.cmpi eq, %23, %24 : vector<8x256xi32>
    %26 = arith.extui %25 : vector<8x256xi1> to vector<8x256xi32>
    %27 = arith.sitofp %26 : vector<8x256xi32> to vector<8x256xf32>
    %28 = vector.extract_strided_slice %0 {offsets = [0, 3], sizes = [8, 1], strides = [1, 1]} : vector<8x8xi32> to vector<8x1xi32>
    %c128_i32_6 = arith.constant 128 : i32
    %29 = vector.broadcast %c128_i32_6 : i32 to vector<8x1xi32>
    %30 = arith.addi %28, %29 : vector<8x1xi32>
    %31 = vector.broadcast %2 : vector<1x256xi32> to vector<8x256xi32>
    %32 = vector.broadcast %30 : vector<8x1xi32> to vector<8x256xi32>
    %33 = arith.cmpi eq, %31, %32 : vector<8x256xi32>
    %34 = arith.extui %33 : vector<8x256xi1> to vector<8x256xi32>
    %35 = arith.sitofp %34 : vector<8x256xi32> to vector<8x256xf32>
    %36 = arith.addf %27, %35 : vector<8x256xf32>
    %c256 = arith.constant 256 : index
    %c0_7 = arith.constant 0 : index
    %37 = vector.load %arg2[%c256, %c0_7] : memref<1152x32xf32, #tpu.memory_space<vmem>>, vector<256x32xf32>
    %cst_8 = arith.constant dense<0.000000e+00> : vector<8x32xf32>
    %38 = tpu.matmul %36, %37, %cst_8 {dimension_numbers = #tpu.dot_dimension_numbers<[1], [0], [0], [1], [0, 0, 1, 1], [], []>} : vector<8x256xf32>, vector<256x32xf32>, vector<8x32xf32> -> vector<8x32xf32>
    %39 = arith.addf %21, %38 : vector<8x32xf32>
    %40 = vector.extract_strided_slice %0 {offsets = [0, 4], sizes = [8, 1], strides = [1, 1]} : vector<8x8xi32> to vector<8x1xi32>
    %41 = vector.broadcast %2 : vector<1x256xi32> to vector<8x256xi32>
    %42 = vector.broadcast %40 : vector<8x1xi32> to vector<8x256xi32>
    %43 = arith.cmpi eq, %41, %42 : vector<8x256xi32>
    %44 = arith.extui %43 : vector<8x256xi1> to vector<8x256xi32>
    %45 = arith.sitofp %44 : vector<8x256xi32> to vector<8x256xf32>
    %46 = vector.extract_strided_slice %0 {offsets = [0, 5], sizes = [8, 1], strides = [1, 1]} : vector<8x8xi32> to vector<8x1xi32>
    %c128_i32_9 = arith.constant 128 : i32
    %47 = vector.broadcast %c128_i32_9 : i32 to vector<8x1xi32>
    %48 = arith.addi %46, %47 : vector<8x1xi32>
    %49 = vector.broadcast %2 : vector<1x256xi32> to vector<8x256xi32>
    %50 = vector.broadcast %48 : vector<8x1xi32> to vector<8x256xi32>
    %51 = arith.cmpi eq, %49, %50 : vector<8x256xi32>
    %52 = arith.extui %51 : vector<8x256xi1> to vector<8x256xi32>
    %53 = arith.sitofp %52 : vector<8x256xi32> to vector<8x256xf32>
    %54 = arith.addf %45, %53 : vector<8x256xf32>
    %c512 = arith.constant 512 : index
    %c0_10 = arith.constant 0 : index
    %55 = vector.load %arg2[%c512, %c0_10] : memref<1152x32xf32, #tpu.memory_space<vmem>>, vector<256x32xf32>
    %cst_11 = arith.constant dense<0.000000e+00> : vector<8x32xf32>
    %56 = tpu.matmul %54, %55, %cst_11 {dimension_numbers = #tpu.dot_dimension_numbers<[1], [0], [0], [1], [0, 0, 1, 1], [], []>} : vector<8x256xf32>, vector<256x32xf32>, vector<8x32xf32> -> vector<8x32xf32>
    %57 = arith.addf %39, %56 : vector<8x32xf32>
    %58 = vector.extract_strided_slice %0 {offsets = [0, 6], sizes = [8, 1], strides = [1, 1]} : vector<8x8xi32> to vector<8x1xi32>
    %59 = vector.broadcast %2 : vector<1x256xi32> to vector<8x256xi32>
    %60 = vector.broadcast %58 : vector<8x1xi32> to vector<8x256xi32>
    %61 = arith.cmpi eq, %59, %60 : vector<8x256xi32>
    %62 = arith.extui %61 : vector<8x256xi1> to vector<8x256xi32>
    %63 = arith.sitofp %62 : vector<8x256xi32> to vector<8x256xf32>
    %64 = vector.extract_strided_slice %0 {offsets = [0, 7], sizes = [8, 1], strides = [1, 1]} : vector<8x8xi32> to vector<8x1xi32>
    %c128_i32_12 = arith.constant 128 : i32
    %65 = vector.broadcast %c128_i32_12 : i32 to vector<8x1xi32>
    %66 = arith.addi %64, %65 : vector<8x1xi32>
    %67 = vector.broadcast %2 : vector<1x256xi32> to vector<8x256xi32>
    %68 = vector.broadcast %66 : vector<8x1xi32> to vector<8x256xi32>
    %69 = arith.cmpi eq, %67, %68 : vector<8x256xi32>
    %70 = arith.extui %69 : vector<8x256xi1> to vector<8x256xi32>
    %71 = arith.sitofp %70 : vector<8x256xi32> to vector<8x256xf32>
    %72 = arith.addf %63, %71 : vector<8x256xf32>
    %c768 = arith.constant 768 : index
    %c0_13 = arith.constant 0 : index
    %73 = vector.load %arg2[%c768, %c0_13] : memref<1152x32xf32, #tpu.memory_space<vmem>>, vector<256x32xf32>
    %cst_14 = arith.constant dense<0.000000e+00> : vector<8x32xf32>
    %74 = tpu.matmul %72, %73, %cst_14 {dimension_numbers = #tpu.dot_dimension_numbers<[1], [0], [0], [1], [0, 0, 1, 1], [], []>} : vector<8x256xf32>, vector<256x32xf32>, vector<8x32xf32> -> vector<8x32xf32>
    %75 = arith.addf %57, %74 : vector<8x32xf32>
    %76 = vector.extract_strided_slice %1 {offsets = [0, 0], sizes = [1, 32], strides = [1, 1]} : vector<8x32xf32> to vector<1x32xf32>
    %77 = vector.broadcast %76 : vector<1x32xf32> to vector<8x32xf32>
    %78 = arith.addf %75, %77 : vector<8x32xf32>
    %cst_15 = arith.constant 0.000000e+00 : f32
    %79 = vector.broadcast %cst_15 : f32 to vector<8x32xf32>
    %80 = arith.maximumf %78, %79 : vector<8x32xf32>
    %c1024 = arith.constant 1024 : index
    %c0_16 = arith.constant 0 : index
    %81 = vector.load %arg2[%c1024, %c0_16] : memref<1152x32xf32, #tpu.memory_space<vmem>>, vector<32x32xf32>
    %cst_17 = arith.constant dense<0.000000e+00> : vector<8x32xf32>
    %82 = tpu.matmul %80, %81, %cst_17 {dimension_numbers = #tpu.dot_dimension_numbers<[1], [0], [0], [1], [0, 0, 1, 1], [], []>} : vector<8x32xf32>, vector<32x32xf32>, vector<8x32xf32> -> vector<8x32xf32>
    %83 = vector.extract_strided_slice %1 {offsets = [1, 0], sizes = [1, 32], strides = [1, 1]} : vector<8x32xf32> to vector<1x32xf32>
    %84 = vector.broadcast %83 : vector<1x32xf32> to vector<8x32xf32>
    %85 = arith.addf %82, %84 : vector<8x32xf32>
    %cst_18 = arith.constant 0.000000e+00 : f32
    %86 = vector.broadcast %cst_18 : f32 to vector<8x32xf32>
    %87 = arith.maximumf %85, %86 : vector<8x32xf32>
    %c1056 = arith.constant 1056 : index
    %c0_19 = arith.constant 0 : index
    %88 = vector.load %arg2[%c1056, %c0_19] : memref<1152x32xf32, #tpu.memory_space<vmem>>, vector<32x32xf32>
    %cst_20 = arith.constant dense<0.000000e+00> : vector<8x32xf32>
    %89 = tpu.matmul %87, %88, %cst_20 {dimension_numbers = #tpu.dot_dimension_numbers<[1], [0], [0], [1], [0, 0, 1, 1], [], []>} : vector<8x32xf32>, vector<32x32xf32>, vector<8x32xf32> -> vector<8x32xf32>
    %90 = vector.extract_strided_slice %1 {offsets = [2, 0], sizes = [1, 32], strides = [1, 1]} : vector<8x32xf32> to vector<1x32xf32>
    %91 = vector.broadcast %90 : vector<1x32xf32> to vector<8x32xf32>
    %92 = arith.addf %89, %91 : vector<8x32xf32>
    %cst_21 = arith.constant 0.000000e+00 : f32
    %93 = vector.broadcast %cst_21 : f32 to vector<8x32xf32>
    %94 = arith.maximumf %92, %93 : vector<8x32xf32>
    %c1088 = arith.constant 1088 : index
    %c0_22 = arith.constant 0 : index
    %95 = vector.load %arg2[%c1088, %c0_22] : memref<1152x32xf32, #tpu.memory_space<vmem>>, vector<32x32xf32>
    %cst_23 = arith.constant dense<0.000000e+00> : vector<8x32xf32>
    %96 = tpu.matmul %94, %95, %cst_23 {dimension_numbers = #tpu.dot_dimension_numbers<[1], [0], [0], [1], [0, 0, 1, 1], [], []>} : vector<8x32xf32>, vector<32x32xf32>, vector<8x32xf32> -> vector<8x32xf32>
    %97 = vector.extract_strided_slice %1 {offsets = [3, 0], sizes = [1, 32], strides = [1, 1]} : vector<8x32xf32> to vector<1x32xf32>
    %98 = vector.broadcast %97 : vector<1x32xf32> to vector<8x32xf32>
    %99 = arith.addf %96, %98 : vector<8x32xf32>
    %cst_24 = arith.constant 0.000000e+00 : f32
    %100 = vector.broadcast %cst_24 : f32 to vector<8x32xf32>
    %101 = arith.maximumf %99, %100 : vector<8x32xf32>
    %c1120 = arith.constant 1120 : index
    %c0_25 = arith.constant 0 : index
    %102 = vector.load %arg2[%c1120, %c0_25] : memref<1152x32xf32, #tpu.memory_space<vmem>>, vector<32x32xf32>
    %cst_26 = arith.constant dense<0.000000e+00> : vector<8x32xf32>
    %103 = tpu.matmul %101, %102, %cst_26 {dimension_numbers = #tpu.dot_dimension_numbers<[1], [0], [0], [1], [0, 0, 1, 1], [], []>} : vector<8x32xf32>, vector<32x32xf32>, vector<8x32xf32> -> vector<8x32xf32>
    %104 = vector.extract_strided_slice %1 {offsets = [4, 0], sizes = [1, 32], strides = [1, 1]} : vector<8x32xf32> to vector<1x32xf32>
    %105 = vector.broadcast %104 : vector<1x32xf32> to vector<8x32xf32>
    %106 = arith.addf %103, %105 : vector<8x32xf32>
    %107 = arith.addf %106, %85 : vector<8x32xf32>
    %cst_27 = arith.constant 0.000000e+00 : f32
    %108 = vector.broadcast %cst_27 : f32 to vector<8x32xf32>
    %109 = arith.maximumf %107, %108 : vector<8x32xf32>
    %110 = vector.extract_strided_slice %1 {offsets = [5, 0], sizes = [1, 32], strides = [1, 1]} : vector<8x32xf32> to vector<1x32xf32>
    %111 = vector.extract_strided_slice %1 {offsets = [6, 0], sizes = [1, 1], strides = [1, 1]} : vector<8x32xf32> to vector<1x1xf32>
    %cst_28 = arith.constant dense<0.000000e+00> : vector<1x8xf32>
    %112 = tpu.matmul %110, %109, %cst_28 {dimension_numbers = #tpu.dot_dimension_numbers<[1], [1], [0], [0], [0, 0, 1, 0], [], []>} : vector<1x32xf32>, vector<8x32xf32>, vector<1x8xf32> -> vector<1x8xf32>
    %113 = vector.broadcast %111 : vector<1x1xf32> to vector<1x8xf32>
    %114 = arith.addf %112, %113 : vector<1x8xf32>
    %115 = vector.shape_cast %114 : vector<1x8xf32> to vector<1x1x8xf32>
    %c0_29 = arith.constant 0 : index
    %c0_30 = arith.constant 0 : index
    %c0_31 = arith.constant 0 : index
    %116 = vector.load %arg4[%c0_29, %c0_30, %c0_31] : memref<1x1x8xf32, #tpu.memory_space<vmem>>, vector<1x1x8xf32>
    tpu.vector_store %arg4[%c0_29, %c0_30, %c0_31], %115 {strides = array<i32>} : memref<1x1x8xf32, #tpu.memory_space<vmem>>, vector<1x1x8xf32>,
    return
  }
  func.func @transform_0(%arg0: i32) -> (i32, i32) {
    %c0_i32 = arith.constant 0 : i32
    %c0_i32_0 = arith.constant 0 : i32
    return %arg0, %c0_i32 : i32, i32
  }
  func.func @transform_1(%arg0: i32) -> (i32, i32) {
    %c0_i32 = arith.constant 0 : i32
    %c0_i32_0 = arith.constant 0 : i32
    %c0_i32_1 = arith.constant 0 : i32
    return %c0_i32, %c0_i32_0 : i32, i32
  }
  func.func @transform_2(%arg0: i32) -> (i32, i32) {
    %c0_i32 = arith.constant 0 : i32
    %c0_i32_0 = arith.constant 0 : i32
    %c0_i32_1 = arith.constant 0 : i32
    return %c0_i32, %c0_i32_0 : i32, i32
  }
  func.func @transform_3(%arg0: i32) -> (i32, i32, i32) {
    %c0_i32 = arith.constant 0 : i32
    %c0_i32_0 = arith.constant 0 : i32
    %c0_i32_1 = arith.constant 0 : i32
    return %arg0, %c0_i32, %c0_i32_0 : i32, i32, i32
  }
}

</mosaic_0001>

<bundles_post_ra>
// kernel: tpu_custom_call.1
= control target key start
LH: loop header
LB: loop body
LE: loop exit
PB: predicated region body
PF: predicated region fallthrough
CT: control target
= control target key end

     0   :  { %v1375_v2 = vmov 2   ;;  %v1376_v3 = vmov 0   ;;  %v1377_v25 = vmov 1   ;;  %v1378_v26 = vmov 3   ;;  %s1968_s0 = inlined_call_operand.vmem [shape: s32[8,8], index: 0, kind: input, shape index: {}]   ;;  %s1969_s1 = inlined_call_operand.vmem [shape: f32[1152,32], index: 1, kind: input, shape index: {}]   ;;  %s1970_s2 = inlined_call_operand.vmem [shape: f32[8,32], index: 2, kind: input, shape index: {}]   ;;  %s1971_s3 = inlined_call_operand.hbm [shape: f32[1,1,8], index: 3, kind: output, shape index: {}]  }
   0x1   :  { %v1410_v0 = vld [vmem:[%s1968_s0] sm:$0xff]  ;;  %1342 = vset.pattern.permute.xlu0 %v1375_v2  ;;  %1344 = vset.pattern.permute.xlu1 %v1376_v3  ;;  %v110_v4 = vld [vmem:[%s1969_s1 + $0x188] sm:$0xff]  ;;  %v111_v15 = vld [vmem:[%s1969_s1 + $0x190] sm:$0xff]  ;;  %v1379_v45 = vmov 4   ;;  %v1380_v46 = vmov 5   ;;  %v1381_v60 = vmov 6  }
   0x2   :  { %v109_v1 = vld [vmem:[%s1969_s1 + $0x180] sm:$0xff]  ;;  %21 = vperm.xlu1 %1344, %v1410_v0   ;;  %74 = vperm.xlu0 %1342, %v1410_v0   ;;  %v58_v7 = vld [vmem:[%s1969_s1 + $0x88] sm:$0xff]  ;;  %v1434_v10 = vadd.s32 128, %v1410_v0  ;;  %v112_v17 = vld [vmem:[%s1969_s1 + $0x198] sm:$0xff] }
   0x3   :  { %v57_v5 = vld [vmem:[%s1969_s1 + $0x80] sm:$0xff]  ;;  %v1178_v6 = vpack.c.bf16 %v110_v4, %v109_v1  ;;  %v94_v9 = vld [vmem:[%s1969_s1 + $0x108] sm:$0xff]  ;;  %v59_v18 = vld [vmem:[%s1969_s1 + $0x90] sm:$0xff]  ;;  %v1182_v20 = vpack.c.bf16 %v112_v17, %v111_v15 }
   0x4   :  { %v93_v8 = vld [vmem:[%s1969_s1 + $0x100] sm:$0xff]  ;;  %v1210_v11 = vpack.c.bf16 %v58_v7, %v57_v5  ;;  %v42_v14 = vld [vmem:[%s1969_s1 + $0x8] sm:$0xff]  ;;  %v60_v19 = vld [vmem:[%s1969_s1 + $0x98] sm:$0xff] }
   0x5   :  { %v1180_v12 = vpack.c.bf16 %v94_v9, %v93_v8  ;;  %v41_v13 = vld [vmem:[%s1969_s1] sm:$0xff]  ;;  %1179 = vmatprep.subr.bf16.mxu0 %v1178_v6  ;;  %v1214_v21 = vpack.c.bf16 %v60_v19, %v59_v18  ;;  %v95_v22 = vld [vmem:[%s1969_s1 + $0x110] sm:$0xff]  ;;  %v96_v23 = vld [vmem:[%s1969_s1 + $0x118] sm:$0xff] }
   0x6   :  { %v1212_v16 = vpack.c.bf16 %v42_v14, %v41_v13  ;;  %1211 = vmatprep.subr.bf16.mxu1 %v1210_v11  ;;  %v43_v24 = vld [vmem:[%s1969_s1 + $0x10] sm:$0xff]  ;;  %1345 = vset.pattern.permute.xlu1 %v1377_v25  ;;  %v1184_v27 = vpack.c.bf16 %v96_v23, %v95_v22  ;;  %v44_v28 = vld [vmem:[%s1969_s1 + $0x18] sm:$0xff]  ;;  %v113_v29 = vld [vmem:[%s1969_s1 + $0x1a0] sm:$0xff] }
   0x7   :  { %1181 = vmatpush3.bf16.msra.mxu0 %v1180_v12  ;;  %1343 = vset.pattern.permute.xlu0 %v1378_v26  ;;  %v114_v30 = vld [vmem:[%s1969_s1 + $0x1a8] sm:$0xff]  ;;  %v61_v32 = vld [vmem:[%s1969_s1 + $0xa0] sm:$0xff]  ;;  %v1216_v36 = vpack.c.bf16 %v44_v28, %v43_v24  ;;  %v115_v38 = vld [vmem:[%s1969_s1 + $0x1b0] sm:$0xff]  ;;  %v1382_v12 = vmov 7  }
   0x8   :  { %31 = vperm.xlu1 %1345, %v1434_v10   ;;  %83 = vperm.xlu0 %1343, %v1434_v10   ;;  %v1186_v31 = vpack.c.bf16 %v114_v30, %v113_v29  ;;  %v62_v33 = vld [vmem:[%s1969_s1 + $0xa8] sm:$0xff]  ;;  %v97_v34 = vld [vmem:[%s1969_s1 + $0x120] sm:$0xff]  ;;  %v116_v39 = vld [vmem:[%s1969_s1 + $0x1b8] sm:$0xff] }
   0x9   :  { %1213 = vmatpush3.bf16.msra.mxu1 %v1212_v16  ;;  %1183 = vmatprep.subr.bf16.mxu0 %v1182_v20  ;;  %v98_v35 = vld [vmem:[%s1969_s1 + $0x128] sm:$0xff]  ;;  %v1218_v40 = vpack.c.bf16 %v62_v33, %v61_v32  ;;  %v45_v41 = vld [vmem:[%s1969_s1 + $0x20] sm:$0xff]  ;;  %v1190_v43 = vpack.c.bf16 %v116_v39, %v115_v38  ;;  %v63_v44 = vld [vmem:[%s1969_s1 + $0xb0] sm:$0xff] }
   0xa   :  { %1215 = vmatprep.subr.bf16.mxu1 %v1214_v21  ;;  %v1188_v37 = vpack.c.bf16 %v98_v35, %v97_v34  ;;  %v46_v42 = vld [vmem:[%s1969_s1 + $0x28] sm:$0xff]  ;;  %v64_v47 = vld [vmem:[%s1969_s1 + $0xb8] sm:$0xff]  ;;  %v99_v48 = vld [vmem:[%s1969_s1 + $0x130] sm:$0xff] }
   0xb   :  { %1185 = vmatpush3.bf16.msra.mxu0 %v1184_v27  ;;  %v100_v49 = vld [vmem:[%s1969_s1 + $0x138] sm:$0xff]  ;;  %v117_v50 = vld [vmem:[%s1969_s1 + $0x1c0] sm:$0xff]  ;;  %v118_v51 = vld [vmem:[%s1969_s1 + $0x1c8] sm:$0xff]  ;;  %v1220_v52 = vpack.c.bf16 %v46_v42, %v45_v41  ;;  %v1222_v53 = vpack.c.bf16 %v64_v47, %v63_v44 }
   0xc   :  { %1187 = vmatprep.subr.bf16.mxu0 %v1186_v31  ;;  %1346 = vset.pattern.permute.xlu1 %v1379_v45  ;;  %v1192_v54 = vpack.c.bf16 %v100_v49, %v99_v48  ;;  %v47_v55 = vld [vmem:[%s1969_s1 + $0x30] sm:$0xff]  ;;  %v48_v56 = vld [vmem:[%s1969_s1 + $0x38] sm:$0xff]  ;;  %v1194_v57 = vpack.c.bf16 %v118_v51, %v117_v50  ;;  %v65_v58 = vld [vmem:[%s1969_s1 + $0xc0] sm:$0xff] }
   0xd   :  { %1347 = vset.pattern.permute.xlu0 %v1380_v46  ;;  %266 = vperm.xlu1 %1346, %v1410_v0   ;;  %v66_v59 = vld [vmem:[%s1969_s1 + $0xc8] sm:$0xff]  ;;  %v101_v61 = vld [vmem:[%s1969_s1 + $0x140] sm:$0xff]  ;;  %v1224_v63 = vpack.c.bf16 %v48_v56, %v47_v55  ;;  %v119_v1 = vld [vmem:[%s1969_s1 + $0x1d0] sm:$0xff] }
   0xe   :  { %275 = vperm.xlu0 %1347, %v1434_v10   ;;  %1217 = vmatpush3.bf16.msra.mxu1 %v1216_v36  ;;  %v102_v62 = vld [vmem:[%s1969_s1 + $0x148] sm:$0xff]  ;;  %v120_v2 = vld [vmem:[%s1969_s1 + $0x1d8] sm:$0xff]  ;;  %v1226_v4 = vpack.c.bf16 %v66_v59, %v65_v58  ;;  %v49_v5 = vld [vmem:[%s1969_s1 + $0x40] sm:$0xff] }
   0xf   :  { %1189 = vmatpush3.bf16.msra.mxu0 %v1188_v37  ;;  %1219 = vmatprep.subr.bf16.mxu1 %v1218_v40  ;;  %v67_v6 = vld [vmem:[%s1969_s1 + $0xd0] sm:$0xff]  ;;  %v68_v7 = vld [vmem:[%s1969_s1 + $0xd8] sm:$0xff]  ;;  %v1198_v8 = vpack.c.bf16 %v120_v2, %v119_v1  ;;  %v121_v14 = vld [vmem:[%s1969_s1 + $0x1e0] sm:$0xff] }
  0x10   :  { %1191 = vmatprep.subr.bf16.mxu0 %v1190_v43  ;;  %v103_v9 = vld [vmem:[%s1969_s1 + $0x150] sm:$0xff]  ;;  %v104_v11 = vld [vmem:[%s1969_s1 + $0x158] sm:$0xff]  ;;  %v122_v15 = vld [vmem:[%s1969_s1 + $0x1e8] sm:$0xff]  ;;  %v1230_v16 = vpack.c.bf16 %v68_v7, %v67_v6 }
  0x11   :  { %1348 = vset.pattern.permute.xlu1 %v1381_v60  ;;  %v51_v17 = vld [vmem:[%s1969_s1 + $0x50] sm:$0xff]  ;;  %v52_v18 = vld [vmem:[%s1969_s1 + $0x58] sm:$0xff]  ;;  %v1200_v19 = vpack.c.bf16 %v104_v11, %v103_v9  ;;  %v69_v20 = vld [vmem:[%s1969_s1 + $0xe0] sm:$0xff]  ;;  %v1202_v21 = vpack.c.bf16 %v122_v15, %v121_v14 }
  0x12   :  { %1350 = vset.pattern.permute.xlu0 %v1376_v3  ;;  %389 = vperm.xlu1 %1348, %v1410_v0   ;;  %v50_v0 = vld [vmem:[%s1969_s1 + $0x48] sm:$0xff]  ;;  %v1196_v3 = vpack.c.bf16 %v102_v62, %v101_v61  ;;  %v105_v22 = vld [vmem:[%s1969_s1 + $0x160] sm:$0xff]  ;;  %v1232_v24 = vpack.c.bf16 %v52_v18, %v51_v17  ;;  %v123_v25 = vld [vmem:[%s1969_s1 + $0x1f0] sm:$0xff] }
  0x13   :  { %1221 = vmatpush3.bf16.msra.mxu1 %v1220_v52  ;;  %1193 = vmatpush3.bf16.msra.mxu0 %v1192_v54  ;;  %v1228_v13 = vpack.c.bf16 %v50_v0, %v49_v5  ;;  %v106_v23 = vld [vmem:[%s1969_s1 + $0x168] sm:$0xff]  ;;  %v124_v26 = vld [vmem:[%s1969_s1 + $0x1f8] sm:$0xff]  ;;  %v53_v28 = vld [vmem:[%s1969_s1 + $0x60] sm:$0xff] }
  0x14   :  { %1223 = vmatprep.subr.bf16.mxu1 %v1222_v53  ;;  %1195 = vmatprep.subr.bf16.mxu0 %v1194_v57  ;;  %v54_v29 = vld [vmem:[%s1969_s1 + $0x68] sm:$0xff]  ;;  %v1204_v30 = vpack.c.bf16 %v106_v23, %v105_v22  ;;  %v71_v31 = vld [vmem:[%s1969_s1 + $0xf0] sm:$0xff]  ;;  %v72_v32 = vld [vmem:[%s1969_s1 + $0xf8] sm:$0xff]  ;;  %v1206_v33 = vpack.c.bf16 %v124_v26, %v123_v25 }
  0x15   :  { %v107_v34 = vld [vmem:[%s1969_s1 + $0x170] sm:$0xff]  ;;  %v108_v35 = vld [vmem:[%s1969_s1 + $0x178] sm:$0xff]  ;;  %v1236_v36 = vpack.c.bf16 %v54_v29, %v53_v28  ;;  %v301_v37 = vld [vmem:[%s1969_s1 + $0x280] sm:$0xff]  ;;  %v1238_v39 = vpack.c.bf16 %v72_v32, %v71_v31 }
  0x16   :  { %1349 = vset.pattern.permute.xlu1 %v1382_v12  ;;  %v302_v38 = vld [vmem:[%s1969_s1 + $0x288] sm:$0xff]  ;;  %v55_v40 = vld [vmem:[%s1969_s1 + $0x70] sm:$0xff]  ;;  %v56_v41 = vld [vmem:[%s1969_s1 + $0x78] sm:$0xff]  ;;  %v1208_v42 = vpack.c.bf16 %v108_v35, %v107_v34 }
  0x17   :  { %1225 = vmatpush3.bf16.msra.mxu1 %v1224_v63  ;;  %398 = vperm.xlu1 %1349, %v1434_v10   ;;  %v70_v10 = vld [vmem:[%s1969_s1 + $0xe8] sm:$0xff]  ;;  %v424_v43 = vld [vmem:[%s1969_s1 + $0x380] sm:$0xff]  ;;  %v1242_v45 = vpack.c.bf16 %v302_v38, %v301_v37  ;;  %v1240_v46 = vpack.c.bf16 %v56_v41, %v55_v40 }
  0x18   :  { %1227 = vmatprep.subr.bf16.mxu1 %v1226_v4  ;;  %1197 = vmatpush3.bf16.msra.mxu0 %v1196_v3  ;;  %v1234_v27 = vpack.c.bf16 %v70_v10, %v69_v20  ;;  %v425_v44 = vld [vmem:[%s1969_s1 + $0x388] sm:$0xff] }
  0x19   :  { %1199 = vmatprep.subr.bf16.mxu0 %v1198_v8  ;;  %v1274_v47 = vpack.c.bf16 %v425_v44, %v424_v43 }
  0x1b   :  { %1229 = vmatpush3.bf16.msra.mxu1 %v1228_v13 }
  0x1c   :  { %1231 = vmatprep.subr.bf16.mxu1 %v1230_v16  ;;  %1201 = vmatpush3.bf16.msra.mxu0 %v1200_v19 }
  0x1d   :  { %1203 = vmatprep.subr.bf16.mxu0 %v1202_v21 }
  0x1f   :  { %1233 = vmatpush3.bf16.msra.mxu1 %v1232_v24 }
  0x20   :  { %1235 = vmatprep.subr.bf16.mxu1 %v1234_v27  ;;  %1205 = vmatpush3.bf16.msra.mxu0 %v1204_v30 }
  0x21   :  { %1207 = vmatprep.subr.bf16.mxu0 %v1206_v33 }
  0x23   :  { %1237 = vmatpush3.bf16.msra.mxu1 %v1236_v36 }
  0x24   :  { %1239 = vmatprep.subr.bf16.mxu1 %v1238_v39  ;;  %1209 = vmatpush3.bf16.msra.mxu0 %v1208_v42 }
  0x25   :  { %1243 = vmatprep.subr.bf16.mxu0 %v1242_v45 }
  0x27   :  { %1241 = vmatpush3.bf16.msra.mxu1 %v1240_v46 }
  0x28   :  { %1275 = vmatprep.subr.bf16.mxu1 %v1274_v47 }
  0x29   :  { %8 = vsyncpa [#allocation3], 0  ;;  %v17_v48 = vlaneseq  ;;  %v285_v53 = vld [vmem:[%s1969_s1 + $0x200] sm:$0xff]  ;;  %v286_v54 = vld [vmem:[%s1969_s1 + $0x208] sm:$0xff]  ;;  %v1383_v59 = vmov 0.0  }
  0x2a   :  { %v408_v55 = vld [vmem:[%s1969_s1 + $0x300] sm:$0xff]  ;;  %v409_v56 = vld [vmem:[%s1969_s1 + $0x308] sm:$0xff]  ;;  %v1244_v57 = vpack.c.bf16 %v286_v54, %v285_v53  ;;  %v303_v4 = vld [vmem:[%s1969_s1 + $0x290] sm:$0xff] }
  0x2b   :  { %v1630_v49 = vand.u32 127, %v17_v48  ;;  %v1276_v58 = vpack.c.bf16 %v409_v56, %v408_v55  ;;  %v304_v5 = vld [vmem:[%s1969_s1 + $0x298] sm:$0xff]  ;;  %v426_v0 = vld [vmem:[%s1969_s1 + $0x390] sm:$0xff]  ;;  %v305_v10 = vld [vmem:[%s1969_s1 + $0x2a0] sm:$0xff] }
  0x2c   :  { %v427_v3 = vld [vmem:[%s1969_s1 + $0x398] sm:$0xff]  ;;  %v287_v15 = vld [vmem:[%s1969_s1 + $0x210] sm:$0xff]  ;;  %v1246_v17 = vpack.c.bf16 %v304_v5, %v303_v4  ;;  %v306_v21 = vld [vmem:[%s1969_s1 + $0x2a8] sm:$0xff] }
  0x2d   :  { %v1633_v50 = vadd.s32 128, %v1630_v49  ;;  %v288_v16 = vld [vmem:[%s1969_s1 + $0x218] sm:$0xff]  ;;  %v1278_v18 = vpack.c.bf16 %v427_v3, %v426_v0  ;;  %v410_v19 = vld [vmem:[%s1969_s1 + $0x310] sm:$0xff]  ;;  %v428_v22 = vld [vmem:[%s1969_s1 + $0x3a0] sm:$0xff]  ;;  %v1250_v31 = vpack.c.bf16 %v306_v21, %v305_v10 }
  0x2e   :  { %v411_v20 = vld [vmem:[%s1969_s1 + $0x318] sm:$0xff]  ;;  %v429_v23 = vld [vmem:[%s1969_s1 + $0x3a8] sm:$0xff]  ;;  %v1248_v26 = vpack.c.bf16 %v288_v16, %v287_v15  ;;  %v289_v28 = vld [vmem:[%s1969_s1 + $0x220] sm:$0xff] }
  0x2f   :  { %v1280_v27 = vpack.c.bf16 %v411_v20, %v410_v19  ;;  %v290_v29 = vld [vmem:[%s1969_s1 + $0x228] sm:$0xff]  ;;  %v1282_v32 = vpack.c.bf16 %v429_v23, %v428_v22  ;;  %v412_v33 = vld [vmem:[%s1969_s1 + $0x320] sm:$0xff]  ;;  %v307_v35 = vld [vmem:[%s1969_s1 + $0x2b0] sm:$0xff] }
  0x30   :  { %v413_v34 = vld [vmem:[%s1969_s1 + $0x328] sm:$0xff]  ;;  %v308_v37 = vld [vmem:[%s1969_s1 + $0x2b8] sm:$0xff]  ;;  %v430_v38 = vld [vmem:[%s1969_s1 + $0x3b0] sm:$0xff]  ;;  %v1252_v42 = vpack.c.bf16 %v290_v29, %v289_v28 }
  0x31   :  { %v431_v39 = vld [vmem:[%s1969_s1 + $0x3b8] sm:$0xff]  ;;  %v1284_v43 = vpack.c.bf16 %v413_v34, %v412_v33  ;;  %v291_v44 = vld [vmem:[%s1969_s1 + $0x230] sm:$0xff]  ;;  %v1254_v46 = vpack.c.bf16 %v308_v37, %v307_v35  ;;  %v309_v53 = vld [vmem:[%s1969_s1 + $0x2c0] sm:$0xff] }
  0x32   :  { %v292_v45 = vld [vmem:[%s1969_s1 + $0x238] sm:$0xff]  ;;  %v1286_v47 = vpack.c.bf16 %v431_v39, %v430_v38  ;;  %v310_v54 = vld [vmem:[%s1969_s1 + $0x2c8] sm:$0xff]  ;;  %v432_v55 = vld [vmem:[%s1969_s1 + $0x3c0] sm:$0xff] }
  0x33   :  { %v433_v56 = vld [vmem:[%s1969_s1 + $0x3c8] sm:$0xff]  ;;  %v416_v4 = vld [vmem:[%s1969_s1 + $0x340] sm:$0xff]  ;;  %v311_v0 = vld [vmem:[%s1969_s1 + $0x2d0] sm:$0xff] }
  0x34   :  { %v417_v5 = vld [vmem:[%s1969_s1 + $0x348] sm:$0xff]  ;;  %v312_v3 = vld [vmem:[%s1969_s1 + $0x2d8] sm:$0xff]  ;;  %v418_v16 = vld [vmem:[%s1969_s1 + $0x350] sm:$0xff] }
  0x35   :  { %v314_v19 = vld [vmem:[%s1969_s1 + $0x2e8] sm:$0xff]  ;;  %v436_v20 = vld [vmem:[%s1969_s1 + $0x3e0] sm:$0xff]  ;;  %v438_v33 = vld [vmem:[%s1969_s1 + $0x3f0] sm:$0xff] }
  0x36   :  { %v437_v10 = vld [vmem:[%s1969_s1 + $0x3e8] sm:$0xff]  ;;  %v297_v23 = vld [vmem:[%s1969_s1 + $0x260] sm:$0xff]  ;;  %v439_v34 = vld [vmem:[%s1969_s1 + $0x3f8] sm:$0xff] }
  0x37   :  { %v1298_v28 = vpack.c.bf16 %v437_v10, %v436_v20  ;;  %v420_v29 = vld [vmem:[%s1969_s1 + $0x360] sm:$0xff]  ;;  %v299_v37 = vld [vmem:[%s1969_s1 + $0x270] sm:$0xff]  ;;  %v1302_v39 = vpack.c.bf16 %v439_v34, %v438_v33 }
  0x38   :  { %v682_v10 = vld [vmem:[%s1969_s1 + $0x440] sm:$0xff] }
  0x39   :  { %v764_v34 = vld [vmem:[%s1969_s1 + $0x460] sm:$0xff] }
  0x81   :  { %v75_v51 = vpop.permute.xlu0 %74  ;;  %v22_v52 = vpop.permute.xlu1 %21 }
  0x82   :  { %vm76_vm0 = vcmp.eq.s32.totalorder %v1630_v49, %v75_v51  ;;  %vm77_vm1 = vcmp.eq.s32.totalorder %v1633_v50, %v75_v51  ;;  %vm23_vm2 = vcmp.eq.s32.totalorder %v1630_v49, %v22_v52  ;;  %vm24_vm3 = vcmp.eq.s32.totalorder %v1633_v50, %v22_v52  ;;  %v414_v51 = vld [vmem:[%s1969_s1 + $0x330] sm:$0xff]  ;;  %v415_v52 = vld [vmem:[%s1969_s1 + $0x338] sm:$0xff] }
  0x83   :  { %v949_v60 = vsel %vm76_vm0, 1.0, %v1383_v59  ;;  %v945_v61 = vsel %vm23_vm2, 1.0, %v1383_v59  ;;  %v950_v1 = vsel %vm77_vm1, 1.0, %v1383_v59  ;;  %v946_v2 = vsel %vm24_vm3, 1.0, %v1383_v59 }
  0x84   :  { %vm1385_vm0 = vmmov 0   ;;  %vm525_vm1 = vcmask 261120   ;;  %vm929_vm2 = vcmask 57344  }
  0x87   :  { %v32_v62 = vpop.permute.xlu1 %31  ;;  %v84_v63 = vpop.permute.xlu0 %83 }
  0x88   :  { %vm33_vm4 = vcmp.eq.s32.totalorder %v1630_v49, %v32_v62  ;;  %vm34_vm5 = vcmp.eq.s32.totalorder %v1633_v50, %v32_v62  ;;  %vm85_vm6 = vcmp.eq.s32.totalorder %v1630_v49, %v84_v63  ;;  %vm86_vm7 = vcmp.eq.s32.totalorder %v1633_v50, %v84_v63 }
  0x89   :  { %v947_v6 = vsel %vm33_vm4, 1.0, %v1383_v59  ;;  %v951_v7 = vsel %vm85_vm6, 1.0, %v1383_v59  ;;  %v952_v8 = vsel %vm86_vm7, 1.0, %v1383_v59  ;;  %v948_v9 = vsel %vm34_vm5, 1.0, %v1383_v59 }
  0x8a   :  { %v39_v11 = vadd.f32 %v947_v6, %v945_v61  ;;  %v91_v12 = vadd.f32 %v951_v7, %v949_v60  ;;  %v92_v13 = vadd.f32 %v952_v8, %v950_v1  ;;  %v40_v14 = vadd.f32 %v948_v9, %v946_v2  ;;  %v293_v60 = vld [vmem:[%s1969_s1 + $0x240] sm:$0xff]  ;;  %v294_v61 = vld [vmem:[%s1969_s1 + $0x248] sm:$0xff]  ;;  %v434_v6 = vld [vmem:[%s1969_s1 + $0x3d0] sm:$0xff] }
  0x8b   :  { %v1258_v1 = vpack.c.bf16 %v310_v54, %v309_v53  ;;  %v1290_v2 = vpack.c.bf16 %v433_v56, %v432_v55  ;;  %v435_v7 = vld [vmem:[%s1969_s1 + $0x3d8] sm:$0xff]  ;;  %v1872_v54 = vld [vmem:[%s1970_s2] sm:$0xff]  ;;  %v1384_v55 = vmov 0.0|0.0   ;;  %v519_v56 = vld [vmem:[%s1969_s1 + $0x410] sm:$0xff] }
  0x8c   :  { %189 = vmatprep.mubr.f32.mxu0 %v92_v13  ;;  %259 = vmatprep.mubr.f32.mxu1 %v40_v14  ;;  %v1699_v24 = vpop.permute.xlu1 %266  ;;  %v296_v13 = vld [vmem:[%s1969_s1 + $0x258] sm:$0xff]  ;;  %v1262_v14 = vpack.c.bf16 %v312_v3, %v311_v0  ;;  %v1294_v15 = vpack.c.bf16 %v435_v7, %v434_v6  ;;  %v1897_v6 = vshrl.u32 %v17_v48, 7  ;;  %v602_v48 = vld [vmem:[%s1969_s1 + $0x430] sm:$0xff] }
  0x8d   :  { %v1701_v25 = vpop.permute.xlu0 %275  ;;  %190 = vmatmul.mubr.f32.vlgmr.msra.gmra.mrb[0].mxu0 %v91_v12  ;;  %260 = vmatmul.mubr.f32.vlgmr.msra.gmra.mrb[0].mxu1 %v39_v11  ;;  %vm269_vm8 = vcmp.eq.s32.totalorder %v1633_v50, %v1699_v24  ;;  %v1260_v11 = vpack.c.bf16 %v294_v61, %v293_v60  ;;  %v1292_v12 = vpack.c.bf16 %v417_v5, %v416_v4  ;;  %v600_v60 = vld [vmem:[%s1969_s1 + $0x420] sm:$0xff]  ;;  %v601_v61 = vld [vmem:[%s1969_s1 + $0x428] sm:$0xff] }
  0x8e   :  { %1245 = vmatpush3.bf16.msra.mxu0 %v1244_v57  ;;  %1277 = vmatpush3.bf16.msra.mxu1 %v1276_v58  ;;  %v954_v30 = vsel %vm269_vm8, 1.0, %v1383_v59  ;;  %vm278_vm9 = vcmp.eq.s32.totalorder %v1633_v50, %v1701_v25  ;;  %v1256_v57 = vpack.c.bf16 %v292_v45, %v291_v44  ;;  %v1288_v58 = vpack.c.bf16 %v415_v52, %v414_v51  ;;  %v518_v52 = vld [vmem:[%s1969_s1 + $0x408] sm:$0xff] }
  0x8f   :  { %1247 = vmatprep.subr.bf16.mxu0 %v1246_v17  ;;  %1279 = vmatprep.subr.bf16.mxu1 %v1278_v18  ;;  %v956_v36 = vsel %vm278_vm9, 1.0, %v1383_v59  ;;  %v419_v17 = vld [vmem:[%s1969_s1 + $0x358] sm:$0xff]  ;;  %v313_v18 = vld [vmem:[%s1969_s1 + $0x2e0] sm:$0xff]  ;;  %vm268_vm12 = vcmp.eq.s32.totalorder %v1630_v49, %v1699_v24  ;;  %vm277_vm13 = vcmp.eq.s32.totalorder %v1630_v49, %v1701_v25 }
  0x90   :  { %v284_v40 = vadd.f32 %v956_v36, %v954_v30  ;;  %v1296_v22 = vpack.c.bf16 %v419_v17, %v418_v16  ;;  %v421_v30 = vld [vmem:[%s1969_s1 + $0x368] sm:$0xff]  ;;  %849 = vperm.xlu0 %1350, %v1872_v54  }
  0x91   :  { %v1733_v41 = vpop.permute.xlu1 %389  ;;  %v1300_v36 = vpack.c.bf16 %v421_v30, %v420_v29 }
  0x92   :  { %1249 = vmatpush3.bf16.msra.mxu0 %v1248_v26  ;;  %1281 = vmatpush3.bf16.msra.mxu1 %v1280_v27  ;;  %vm392_vm10 = vcmp.eq.s32.totalorder %v1633_v50, %v1733_v41  ;;  %v298_v26 = vld [vmem:[%s1969_s1 + $0x268] sm:$0xff]  ;;  %v1266_v27 = vpack.c.bf16 %v314_v19, %v313_v18  ;;  %vm391_vm14 = vcmp.eq.s32.totalorder %v1630_v49, %v1733_v41  ;;  %v603_v19 = vld [vmem:[%s1969_s1 + $0x438] sm:$0xff] }
  0x93   :  { %1251 = vmatprep.subr.bf16.mxu0 %v1250_v31  ;;  %1283 = vmatprep.subr.bf16.mxu1 %v1282_v32  ;;  %v958_v62 = vsel %vm392_vm10, 1.0, %v1383_v59  ;;  %v315_v31 = vld [vmem:[%s1969_s1 + $0x2f0] sm:$0xff]  ;;  %v316_v32 = vld [vmem:[%s1969_s1 + $0x2f8] sm:$0xff]  ;;  %v1268_v35 = vpack.c.bf16 %v298_v26, %v297_v23  ;;  %v957_v24 = vsel %vm391_vm14, 1.0, %v1383_v59  ;;  %v1316_v20 = vpack.c.bf16 %v603_v19, %v602_v48 }
  0x94   :  { %381 = vmatprep.mubr.f32.mxu0 %v284_v40  ;;  %v1270_v38 = vpack.c.bf16 %v316_v32, %v315_v31  ;;  %v300_v40 = vld [vmem:[%s1969_s1 + $0x278] sm:$0xff]  ;;  %v523_v23 = vsub.s32 1, %v1897_v6  ;;  %v684_v31 = vld [vmem:[%s1969_s1 + $0x450] sm:$0xff] }
  0x95   :  { %v1272_v44 = vpack.c.bf16 %v300_v40, %v299_v37  ;;  %v685_v32 = vld [vmem:[%s1969_s1 + $0x458] sm:$0xff]  ;;  %v606_v37 = vsub.s32 2, %v1897_v6 }
  0x96   :  { %1253 = vmatpush3.bf16.msra.mxu0 %v1252_v42  ;;  %1285 = vmatpush3.bf16.msra.mxu1 %v1284_v43  ;;  %v1768_v63 = vpop.permute.xlu1 %398  ;;  %v422_v42 = vld [vmem:[%s1969_s1 + $0x370] sm:$0xff]  ;;  %v423_v43 = vld [vmem:[%s1969_s1 + $0x378] sm:$0xff]  ;;  %v524_v26 = vrot.slane %v1872_v54, %v523_v23  ;;  %v1322_v33 = vpack.c.bf16 %v685_v32, %v684_v31 }
  0x97   :  { %1255 = vmatprep.subr.bf16.mxu0 %v1254_v46  ;;  %1287 = vmatprep.subr.bf16.mxu1 %v1286_v47  ;;  %vm401_vm11 = vcmp.eq.s32.totalorder %v1633_v50, %v1768_v63  ;;  %v295_v50 = vld [vmem:[%s1969_s1 + $0x250] sm:$0xff]  ;;  %vm400_vm15 = vcmp.eq.s32.totalorder %v1630_v49, %v1768_v63  ;;  %v1304_v45 = vpack.c.bf16 %v423_v43, %v422_v42  ;;  %v953_v46 = vsel %vm268_vm12, 1.0, %v1383_v59  ;;  %v517_v49 = vld [vmem:[%s1969_s1 + $0x400] sm:$0xff] }
  0x98   :  { %v960_v8 = vsel %vm401_vm11, 1.0, %v1383_v59  ;;  %v1264_v21 = vpack.c.bf16 %v296_v13, %v295_v50  ;;  %v955_v47 = vsel %vm277_vm13, 1.0, %v1383_v59  ;;  %v959_v25 = vsel %vm400_vm15, 1.0, %v1383_v59 }
  0x99   :  { %v407_v9 = vadd.f32 %v960_v8, %v958_v62  ;;  %v283_v41 = vadd.f32 %v955_v47, %v953_v46  ;;  %v406_v51 = vadd.f32 %v959_v25, %v957_v24  ;;  %v1307_v53 = vpack.c.bf16 %v518_v52, %v517_v49 }
  0x9a   :  { %1257 = vmatpush3.bf16.msra.mxu0 %v1256_v57  ;;  %1289 = vmatpush3.bf16.msra.mxu1 %v1288_v58  ;;  %v520_v57 = vld [vmem:[%s1969_s1 + $0x418] sm:$0xff]  ;;  %v1313_v62 = vpack.c.bf16 %v601_v61, %v600_v60  ;;  %v688_v47 = vsub.s32 3, %v1897_v6  ;;  %v851_v60 = vrot.slane %v1872_v54, 5 }
  0x9b   :  { %1259 = vmatprep.subr.bf16.mxu0 %v1258_v1  ;;  %1291 = vmatprep.subr.bf16.mxu1 %v1290_v2  ;;  %v1310_v58 = vpack.c.bf16 %v520_v57, %v519_v56 }
  0x9c   :  { %504 = vmatprep.mubr.f32.mxu1 %v407_v9  ;;  %v513_v9 = vsub.s32 0, %v1897_v6  ;;  %v689_v24 = vrot.slane %v1872_v54, %v688_v47 }
  0x9e   :  { %1261 = vmatpush3.bf16.msra.mxu0 %v1260_v11  ;;  %1293 = vmatpush3.bf16.msra.mxu1 %v1292_v12 }
  0x9f   :  { %1263 = vmatprep.subr.bf16.mxu0 %v1262_v14  ;;  %1295 = vmatprep.subr.bf16.mxu1 %v1294_v15  ;;  %v514_v15 = vrot.slane %v1872_v54, %v513_v9 }
  0xa2   :  { %1265 = vmatpush3.bf16.msra.mxu0 %v1264_v21  ;;  %1297 = vmatpush3.bf16.msra.mxu1 %v1296_v22  ;;  %v683_v21 = vld [vmem:[%s1969_s1 + $0x448] sm:$0xff] }
  0xa3   :  { %1267 = vmatprep.subr.bf16.mxu0 %v1266_v27  ;;  %1299 = vmatprep.subr.bf16.mxu1 %v1298_v28  ;;  %v1319_v22 = vpack.c.bf16 %v683_v21, %v682_v10 }
  0xa6   :  { %1269 = vmatpush3.bf16.msra.mxu0 %v1268_v35  ;;  %1301 = vmatpush3.bf16.msra.mxu1 %v1300_v36  ;;  %v765_v35 = vld [vmem:[%s1969_s1 + $0x468] sm:$0xff] }
  0xa7   :  { %1271 = vmatprep.subr.bf16.mxu0 %v1270_v38  ;;  %1303 = vmatprep.subr.bf16.mxu1 %v1302_v39  ;;  %v1325_v36 = vpack.c.bf16 %v765_v35, %v764_v34  ;;  %v607_v38 = vrot.slane %v1872_v54, %v606_v37 }
  0xaa   :  { %1273 = vmatpush3.bf16.msra.mxu0 %v1272_v44  ;;  %1305 = vmatpush3.bf16.msra.mxu1 %v1304_v45  ;;  %v766_v44 = vld [vmem:[%s1969_s1 + $0x470] sm:$0xff]  ;;  %v767_v45 = vld [vmem:[%s1969_s1 + $0x478] sm:$0xff]  ;;  %s1386_s1 = smov [#allocation2]  }
  0xab   :  { %1306 = vmatprep.subr.bf16.mxu0 %v1384_v55  ;;  %1312 = vmatprep.subr.bf16.mxu1 %v1384_v55  ;;  %v1328_v46 = vpack.c.bf16 %v767_v45, %v766_v44  ;;  %s937_s22 = sshll.u32 %s1386_s1, 4  ;;  %s938_s22 = int_to_ptr.vmem [resolvable:$true] %s937_s22 }
  0xac   :  { %s1351_s23 = scalar_lea.vmem %s938_s22, 16  ;;  %s1355_s24 = scalar_lea.vmem %s938_s22, 32 }
  0xad   :  { %382 = vmatmul.mubr.f32.vlgmr.msra.gmra.mrb[2].mxu0 %v283_v41  ;;  %505 = vmatmul.mubr.f32.vlgmr.msra.gmra.mrb[2].mxu1 %v406_v51  ;;  %p1352_p0 = scmp.ne.s32.totalorder %s938_s22, %s1351_s23  ;;  %p1356_p1 = scmp.lt.s32.totalorder %s938_s22, %s938_s22 }
  0xae   :  { %1308 = vmatpush3.bf16.msra.mxu0 %v1307_v53  ;;  %1137 = vmatprep.mubr.msk.f32.mxu0 %vm1385_vm0, %v1383_v59  ;;  %p1357_p2 = scmp.lt.s32.totalorder %s1355_s24, %s1351_s23 }
  0xaf   :  { %1309 = vmatprep.subr.bf16.mxu0 %v1384_v55  ;;  %1148 = vmatprep.mubr.msk.f32.mxu1 %vm1385_vm0, %v1383_v59 }
  0xb0   :  { %1314 = vmatpush3.bf16.msra.mxu1 %v1313_v62  ;;  %p1358_p3 = por %p1357_p2, %p1356_p1 }
  0xb1   :  { %1315 = vmatprep.subr.bf16.mxu1 %v1384_v55 }
  0xb2   :  { %1311 = vmatpush3.bf16.msra.mxu0 %v1310_v58  ;;  %p1359_p4 = pnand %p1358_p3, %p1352_p0 }
  0xb3   :  { %1318 = vmatprep.subr.bf16.mxu0 %v1384_v55 }
  0xb4   :  { %1317 = vmatpush3.bf16.msra.mxu1 %v1316_v20 }
  0xb5   :  { %1324 = vmatprep.subr.bf16.mxu1 %v1384_v55 }
 0x10f   :  { %v850_v61 = vpop.permute.xlu0 %849 }
 0x110   :  { %v852_v62 = vrot.slane %v850_v61, 6 }
 0x160   :  { %v999_v63 = vpop.f32.mrb[0].mxu0  ;;  %v1034_v1 = vpop.f32.mrb[0].mxu1 }
 0x161   :  { %v1000_v2 = vpop.f32.mrb[1].mxu0  ;;  %v1035_v4 = vpop.f32.mrb[1].mxu1 }
 0x162   :  { %v1001_v5 = vadd.f32 %v1000_v2, %v999_v63  ;;  %v1036_v0 = vadd.f32 %v1035_v4, %v1034_v1 }
 0x164   :  { %v262_v3 = vadd.f32 %v1036_v0, %v1001_v5 }
 0x180   :  { %v1069_v7 = vpop.f32.mrb[2].mxu0  ;;  %v1104_v8 = vpop.f32.mrb[2].mxu1 }
 0x181   :  { %v1070_v11 = vpop.f32.mrb[3].mxu0  ;;  %v1105_v12 = vpop.f32.mrb[3].mxu1 }
 0x182   :  { %v1071_v50 = vadd.f32 %v1070_v11, %v1069_v7  ;;  %v1106_v13 = vadd.f32 %v1105_v12, %v1104_v8 }
 0x184   :  { %v387_v14 = vadd.f32 %v1071_v50, %v262_v3 }
 0x186   :  { %v510_v16 = vadd.f32 %v1106_v13, %v387_v14 }
 0x188   :  { %v515_v17 = vadd.f32 %v514_v15, %v510_v16 }
 0x18a   :  { %v516_v18 = vmax.f32 %v515_v17, 0.0 }
 0x18c   :  { %1138 = vmatmul.mubr.msk.f32.vlgmr.msra.gmra.mrb[4].mxu0 %vm525_vm1, %v516_v18 }
 0x18d   :  { %1159 = vmatprep.mubr.msk.f32.mxu0 %vm1385_vm0, %v1383_v59  ;;  %1320 = vmatpush3.bf16.msra.mxu0 %v1319_v22 }
 0x18e   :  { %1321 = vmatprep.subr.bf16.mxu0 %v1384_v55 }
 0x191   :  { %1323 = vmatpush3.bf16.msra.mxu0 %v1322_v33 }
 0x192   :  { %1173 = vmatprep.subr.mxu0 %v1383_v59 }
 0x25f   :  { %v595_v27 = vpop.f32.mrb[4].mxu0 }
 0x260   :  { %v596_v28 = vadd.f32 %v595_v27, %v524_v26  ;;  %v1139_v29 = vpop.f32.mrb[5].mxu0 }
 0x262   :  { %v599_v30 = vmax.f32 %v596_v28, 0.0 }
 0x264   :  { %1149 = vmatmul.mubr.msk.f32.vlgmr.msra.gmra.mrb[4].mxu1 %vm525_vm1, %v599_v30 }
 0x265   :  { %1170 = vmatprep.mubr.msk.f32.mxu1 %vm1385_vm0, %v1383_v59  ;;  %1326 = vmatpush3.bf16.msra.mxu1 %v1325_v36 }
 0x266   :  { %1327 = vmatprep.subr.bf16.mxu1 %v1384_v55 }
 0x269   :  { %1329 = vmatpush3.bf16.msra.mxu1 %v1328_v46 }
 0x337   :  { %v677_v39 = vpop.f32.mrb[4].mxu1 }
 0x338   :  { %v678_v40 = vadd.f32 %v677_v39, %v607_v38  ;;  %v1150_v42 = vpop.f32.mrb[5].mxu1 }
 0x33a   :  { %v681_v43 = vmax.f32 %v678_v40, 0.0 }
 0x33c   :  { %1160 = vmatmul.mubr.msk.f32.vlgmr.msra.gmra.mrb[6].mxu0 %vm525_vm1, %v681_v43 }
 0x33d   :  { %1175 = vmatprep.mubr.msk.f32.mxu0 %vm1385_vm0, %v1383_v59  ;;  %v770_v59 = vsub.s32 4, %v1897_v6 }
 0x33f   :  { %v771_v52 = vrot.slane %v1872_v54, %v770_v59 }
 0x40f   :  { %v759_v25 = vpop.f32.mrb[6].mxu0 }
 0x410   :  { %v760_v41 = vadd.f32 %v759_v25, %v689_v24  ;;  %v1161_v51 = vpop.f32.mrb[7].mxu0 }
 0x412   :  { %v763_v49 = vmax.f32 %v760_v41, 0.0 }
 0x414   :  { %1171 = vmatmul.mubr.msk.f32.vlgmr.msra.gmra.mrb[6].mxu1 %vm525_vm1, %v763_v49 }
 0x4e7   :  { %v841_v53 = vpop.f32.mrb[6].mxu1 }
 0x4e8   :  { %v842_v55 = vadd.f32 %v841_v53, %v771_v52  ;;  %v1172_v56 = vpop.f32.mrb[7].mxu1 }
 0x4ea   :  { %v845_v57 = vadd.f32 %v842_v55, %v596_v28 }
 0x4ec   :  { %v846_v58 = vmax.f32 %v845_v57, 0.0 }
 0x4ee   :  { %1174 = vmatpush3.xpose.msk.msra.mxu0 %vm525_vm1, %v846_v58 }
 0x4f1   :  { %1176 = vmatmul.mubr.msk.f32.vlgmr.msra.gmra.mrb[8].mxu0 %vm525_vm1, %v851_v60 }
 0x5c4   :  { %v925_v63 = vpop.f32.mrb[8].mxu0 }
 0x5c5   :  { %v926_v1 = vadd.f32 %v925_v63, %v852_v62  ;;  %v1177_v2 = vpop.f32.mrb[9].mxu0 }
 0x5c7   :  { %930 = vst.msk [vmem:[#allocation2] sm:$0x1] %vm929_vm2, %v926_v1 }
 0x5c8   :  { %1362 = shalt.err (!%p1359_p4)
}
 0x5c9   :  { %s1363_s2 = scalar_lea.hbm %s1971_s3, 16 }
 0x5ca   :  { %p1364_p5 = scmp.ne.s32.totalorder %s1971_s3, %s1363_s2  ;;  %p1367_p6 = scmp.lt.u32.totalorder %s1363_s2, %s1971_s3 }
 0x5cc   :  { %p1369_p7 = pnand %p1367_p6, %p1364_p5 }
 0x5ce   :  { %1372 = shalt.err (!%p1369_p7)
}
 0x5cf   :  { %940 = dma.vmem_to_hbm [thread:$0]  %s938_s22, 16, %s1971_s3, [#allocation3]  }
 0x5d0   :  { %1373 = dma.done.wait [#allocation3], 16  }
 0x5d1   :  { %1374 = vsyncadd [#allocation3], 4294967280 }
 0x5d2   :  { %944 = vsyncpa [#allocation3], 1 }

</bundles_post_ra>
